<compile_context>
chip_gen: v7x
topology: tpu7x:2x2x1
jax: 0.10.0
libtpu: 0.0.40
codegen_flags: <defaults>
</compile_context>

<pallas_src>
import functools

import jax
import jax.numpy as jnp
from jax.experimental import pallas as pl
from jax.experimental.pallas import tpu as pltpu


def _round_up(x, m):
    return (x + m - 1) // m * m


def _default_compute_dtype():
    """bf16 activations/weights for tanh + MXU on v6e/v7x (bf16 EUP/VPU/MXU);
    f32 on v5e and older chips (no bf16 EUP/VPU there)."""
    try:
        kind = jax.devices()[0].device_kind.lower()
    except Exception:
        return jnp.float32
    if any(tag in kind for tag in ("v6", "v7", "7x")):
        return jnp.bfloat16
    return jnp.float32


def critic_kernel(s_ref, w1_ref, b1_ref, w2_ref, b2_ref, w3_ref, b3_ref, out_ref,
                  *, compute_dtype):
    """One batch tile: out (TB, 1) = fc3(tanh(fc2(tanh(fc1(s (TB, N_S))))))."""
    # fc1: MXU matmul, f32 accumulation; tanh on the EUP (bf16 on v6e/v7x).
    x = jnp.dot(s_ref[...], w1_ref[...], preferred_element_type=jnp.float32) + b1_ref[...]
    x = jnp.tanh(x.astype(compute_dtype))
    # fc2: bf16 x bf16 MXU operands on v6e/v7x, f32 accumulation.
    x = jnp.dot(x, w2_ref[...], preferred_element_type=jnp.float32) + b2_ref[...]
    x = jnp.tanh(x.astype(compute_dtype))
    # fc3 value head as an MXU matmul straight into the (TB, 1) output block.
    # No sublane->lane relayout (the previous sum(...)[None, :] form shuffled
    # ~TB/8 vregs through the XLU every tile); MXU cost hides under the
    # EUP-bound tanh work.
    v = jnp.dot(x, w3_ref[...], preferred_element_type=jnp.float32)   # (TB, 1)
    out_ref[...] = v + b3_ref[...]


def critic_forward(s, params, *, block_b=8192, compute_dtype=None):
    """s: (B, N_S). Returns (B, 1) float32 values (same math as torch Critic)."""
    if compute_dtype is None:
        compute_dtype = _default_compute_dtype()

    B, n_s = s.shape
    w1, b1 = params["w1"], params["b1"]
    w2, b2 = params["w2"], params["b2"]
    w3, b3 = params["w3"], params["b3"]
    hidden = w1.shape[1]

    # Lane-align the feature dim (e.g. Ant N_S=111 -> 128) with zero-padded
    # state columns / w1 rows, but only when the byte blow-up is small (<=25%).
    n_pad = _round_up(n_s, 128)
    if n_pad != n_s and n_pad * 4 <= n_s * 5:
        s = jnp.pad(s, ((0, 0), (0, n_pad - n_s)))
        w1 = jnp.pad(w1, ((0, n_pad - n_s), (0, 0)))
        n_s = n_pad

    # fc2/fc3 operands in the compute dtype so the MXU runs its native bf16
    # path on v6e/v7x; accumulation stays f32 inside the kernel.
    w2c = w2.astype(compute_dtype)
    w3c = w3.astype(compute_dtype)

    # ---- batch tile selection ----------------------------------------------
    block_b = max(8, (block_b // 8) * 8)
    # Keep the double-buffered state tile + activation slabs well under the
    # scoped-VMEM budget on every generation (incl. v7x's 64 MiB VMEM).
    vmem_rows = max(512, ((8 << 20) // (4 * max(n_s, hidden))) // 8 * 8)
    tb = min(block_b, vmem_rows, _round_up(B, 8))
    # Ensure >= 2 grid steps when possible so the "parallel" batch axis can be
    # split across both TensorCores on v7x (no-op on v5e/v6e, 1 TC).
    if B > 8 and pl.cdiv(B, tb) < 2:
        tb = _round_up(pl.cdiv(B, 2), 8)
    num_blocks = pl.cdiv(B, tb)
    b_pad = num_blocks * tb
    if b_pad != B:
        s = jnp.pad(s, ((0, b_pad - B), (0, 0)))

    const = lambda i: (0, 0)   # weights/biases VMEM-resident across all steps

    out = pl.pallas_call(
        functools.partial(critic_kernel, compute_dtype=compute_dtype),
        out_shape=jax.ShapeDtypeStruct((b_pad, 1), jnp.float32),
        grid=(num_blocks,),
        in_specs=[
            pl.BlockSpec((tb, n_s), lambda i: (i, 0)),   # state tile (pipelined DMA)
            pl.BlockSpec((n_s, hidden), const),          # fc1 weight
            pl.BlockSpec((1, hidden), const),            # fc1 bias
            pl.BlockSpec((hidden, hidden), const),       # fc2 weight
            pl.BlockSpec((1, hidden), const),            # fc2 bias
            pl.BlockSpec((hidden, 1), const),            # fc3 weight (column)
            pl.BlockSpec((1, 1), const),                 # fc3 bias
        ],
        out_specs=pl.BlockSpec((tb, 1), lambda i: (i, 0)),
        compiler_params=pltpu.CompilerParams(
            dimension_semantics=("parallel",),           # megacore split on v7x
        ),
    )(s, w1, b1, w2, b2, w3c, b3)

    return out[:B]


def init_params(key, n_s, hidden=64):
    """Deterministic synthetic init mirroring Critic semantics:
    weights ~ N(0, 0.1), biases = 0, fc3 weights additionally scaled by 0.1."""
    k1, k2, k3 = jax.random.split(key, 3)
    w1 = 0.1 * jax.random.normal(k1, (n_s, hidden), dtype=jnp.float32)
    w2 = 0.1 * jax.random.normal(k2, (hidden, hidden), dtype=jnp.float32)
    w3 = 0.1 * 0.1 * jax.random.normal(k3, (hidden, 1), dtype=jnp.float32)
    return {
        "w1": w1, "b1": jnp.zeros((1, hidden), jnp.float32),
        "w2": w2, "b2": jnp.zeros((1, hidden), jnp.float32),
        "w3": w3, "b3": jnp.zeros((1, 1), jnp.float32),
    }


def critic_ref(s, params):
    """Pure-JAX reference for correctness check."""
    x = jnp.tanh(s @ params["w1"] + params["b1"])
    x = jnp.tanh(x @ params["w2"] + params["b2"])
    return x @ params["w3"] + params["b3"]


if __name__ == "__main__":
    key = jax.random.PRNGKey(0)
    k_params, k_in1, k_in2, k_params2, k_in3 = jax.random.split(key, 5)

    # Case 1: tiny single-block batch, forced f32 path, tight tolerance.
    N_S = 32
    params = init_params(k_params, N_S)
    s_small = jax.random.normal(k_in1, (8, N_S), dtype=jnp.float32)
    v_small = jax.block_until_ready(
        critic_forward(s_small, params, compute_dtype=jnp.float32))
    assert v_small.shape == (8, 1)
    assert jnp.allclose(v_small, critic_ref(s_small, params), atol=1e-5, rtol=1e-5)

    # Case 2: multi-block batch (padding + pipelined state DMA), auto dtype
    # (bf16 on v6e/v7x -> looser tolerance, f32 elsewhere).
    s_big = jax.random.normal(k_in2, (300, N_S), dtype=jnp.float32)
    v_big = jax.block_until_ready(critic_forward(s_big, params, block_b=128))
    assert v_big.shape == (300, 1)
    tol = 1e-5 if _default_compute_dtype() == jnp.float32 else 2e-2
    assert jnp.allclose(v_big, critic_ref(s_big, params), atol=tol, rtol=tol)

    # Case 3: Ant-like feature dim (120 -> padded to 128) exercising the
    # feature-pad path and the >=2-grid-step split, f32 for a tight check.
    params_ant = init_params(k_params2, 120)
    s_ant = jax.random.normal(k_in3, (200, 120), dtype=jnp.float32)
    v_ant = jax.block_until_ready(
        critic_forward(s_ant, params_ant, compute_dtype=jnp.float32))
    assert v_ant.shape == (200, 1)
    assert jnp.allclose(v_ant, critic_ref(s_ant, params_ant), atol=1e-5, rtol=1e-5)

    print("KERNEL_OK")
</pallas_src>

<mosaic_0001>
module attributes {stable_mosaic.version = 11 : i64} {
  func.func @critic_kernel(%arg0: i32, %arg1: memref<8x32xf32, #tpu.memory_space<vmem>>, %arg2: memref<32x64xf32, #tpu.memory_space<vmem>>, %arg3: memref<1x64xf32, #tpu.memory_space<vmem>>, %arg4: memref<64x64xf32, #tpu.memory_space<vmem>>, %arg5: memref<1x64xf32, #tpu.memory_space<vmem>>, %arg6: memref<64x1xf32, #tpu.memory_space<vmem>>, %arg7: memref<1x1xf32, #tpu.memory_space<vmem>>, %arg8: memref<8x1xf32, #tpu.memory_space<vmem>>) attributes {dimension_semantics = [#tpu.dimension_semantics<parallel>], iteration_bounds = array<i64: 1>, scalar_prefetch = 0 : i64, scratch_operands = 0 : i64, tpu.core_type = #tpu.core_type<tc>, window_params = [{transform_indices = @transform_0, window_bounds = array<i64: 8, 32>}, {pipeline_mode = #tpu.pipeline_mode<synchronous>, transform_indices = @transform_1, window_bounds = array<i64: 32, 64>}, {pipeline_mode = #tpu.pipeline_mode<synchronous>, transform_indices = @transform_2, window_bounds = array<i64: 1, 64>}, {pipeline_mode = #tpu.pipeline_mode<synchronous>, transform_indices = @transform_3, window_bounds = array<i64: 64, 64>}, {pipeline_mode = #tpu.pipeline_mode<synchronous>, transform_indices = @transform_4, window_bounds = array<i64: 1, 64>}, {pipeline_mode = #tpu.pipeline_mode<synchronous>, transform_indices = @transform_5, window_bounds = array<i64: 64, 1>}, {pipeline_mode = #tpu.pipeline_mode<synchronous>, transform_indices = @transform_6, window_bounds = array<i64: 1, 1>}, {transform_indices = @transform_7, window_bounds = array<i64: 8, 1>}]} {
    %c0 = arith.constant 0 : index
    %c0_0 = arith.constant 0 : index
    %0 = vector.load %arg1[%c0, %c0_0] : memref<8x32xf32, #tpu.memory_space<vmem>>, vector<8x32xf32>
    %c0_1 = arith.constant 0 : index
    %c0_2 = arith.constant 0 : index
    %1 = vector.load %arg2[%c0_1, %c0_2] : memref<32x64xf32, #tpu.memory_space<vmem>>, vector<32x64xf32>
    %cst = arith.constant dense<0.000000e+00> : vector<8x64xf32>
    %2 = tpu.matmul %0, %1, %cst {dimension_numbers = #tpu.dot_dimension_numbers<[1], [0], [0], [1], [0, 0, 1, 1], [], []>} : vector<8x32xf32>, vector<32x64xf32>, vector<8x64xf32> -> vector<8x64xf32>
    %c0_3 = arith.constant 0 : index
    %c0_4 = arith.constant 0 : index
    %3 = vector.load %arg3[%c0_3, %c0_4] : memref<1x64xf32, #tpu.memory_space<vmem>>, vector<1x64xf32>
    %4 = vector.broadcast %3 : vector<1x64xf32> to vector<8x64xf32>
    %5 = arith.addf %2, %4 : vector<8x64xf32>
    %6 = math.tanh %5 : vector<8x64xf32>
    %c0_5 = arith.constant 0 : index
    %c0_6 = arith.constant 0 : index
    %7 = vector.load %arg4[%c0_5, %c0_6] : memref<64x64xf32, #tpu.memory_space<vmem>>, vector<64x64xf32>
    %cst_7 = arith.constant dense<0.000000e+00> : vector<8x64xf32>
    %8 = tpu.matmul %6, %7, %cst_7 {dimension_numbers = #tpu.dot_dimension_numbers<[1], [0], [0], [1], [0, 0, 1, 1], [], []>} : vector<8x64xf32>, vector<64x64xf32>, vector<8x64xf32> -> vector<8x64xf32>
    %c0_8 = arith.constant 0 : index
    %c0_9 = arith.constant 0 : index
    %9 = vector.load %arg5[%c0_8, %c0_9] : memref<1x64xf32, #tpu.memory_space<vmem>>, vector<1x64xf32>
    %10 = vector.broadcast %9 : vector<1x64xf32> to vector<8x64xf32>
    %11 = arith.addf %8, %10 : vector<8x64xf32>
    %12 = math.tanh %11 : vector<8x64xf32>
    %c0_10 = arith.constant 0 : index
    %c0_11 = arith.constant 0 : index
    %13 = vector.load %arg6[%c0_10, %c0_11] : memref<64x1xf32, #tpu.memory_space<vmem>>, vector<64x1xf32>
    %cst_12 = arith.constant dense<0.000000e+00> : vector<8x1xf32>
    %14 = tpu.matmul %12, %13, %cst_12 {dimension_numbers = #tpu.dot_dimension_numbers<[1], [0], [0], [1], [0, 0, 1, 1], [], []>} : vector<8x64xf32>, vector<64x1xf32>, vector<8x1xf32> -> vector<8x1xf32>
    %c0_13 = arith.constant 0 : index
    %c0_14 = arith.constant 0 : index
    %15 = vector.load %arg7[%c0_13, %c0_14] : memref<1x1xf32, #tpu.memory_space<vmem>>, vector<1x1xf32>
    %16 = vector.broadcast %15 : vector<1x1xf32> to vector<8x1xf32>
    %17 = arith.addf %14, %16 : vector<8x1xf32>
    %c0_15 = arith.constant 0 : index
    %c0_16 = arith.constant 0 : index
    %18 = vector.load %arg8[%c0_15, %c0_16] : memref<8x1xf32, #tpu.memory_space<vmem>>, vector<8x1xf32>
    tpu.vector_store %arg8[%c0_15, %c0_16], %17 {strides = array<i32>} : memref<8x1xf32, #tpu.memory_space<vmem>>, vector<8x1xf32>,
    return
  }
  func.func @transform_0(%arg0: i32) -> (i32, i32) {
    %c0_i32 = arith.constant 0 : i32
    %c0_i32_0 = arith.constant 0 : i32
    return %arg0, %c0_i32 : i32, i32
  }
  func.func @transform_1(%arg0: i32) -> (i32, i32) {
    %c0_i32 = arith.constant 0 : i32
    %c0_i32_0 = arith.constant 0 : i32
    %c0_i32_1 = arith.constant 0 : i32
    return %c0_i32, %c0_i32_0 : i32, i32
  }
  func.func @transform_2(%arg0: i32) -> (i32, i32) {
    %c0_i32 = arith.constant 0 : i32
    %c0_i32_0 = arith.constant 0 : i32
    %c0_i32_1 = arith.constant 0 : i32
    return %c0_i32, %c0_i32_0 : i32, i32
  }
  func.func @transform_3(%arg0: i32) -> (i32, i32) {
    %c0_i32 = arith.constant 0 : i32
    %c0_i32_0 = arith.constant 0 : i32
    %c0_i32_1 = arith.constant 0 : i32
    return %c0_i32, %c0_i32_0 : i32, i32
  }
  func.func @transform_4(%arg0: i32) -> (i32, i32) {
    %c0_i32 = arith.constant 0 : i32
    %c0_i32_0 = arith.constant 0 : i32
    %c0_i32_1 = arith.constant 0 : i32
    return %c0_i32, %c0_i32_0 : i32, i32
  }
  func.func @transform_5(%arg0: i32) -> (i32, i32) {
    %c0_i32 = arith.constant 0 : i32
    %c0_i32_0 = arith.constant 0 : i32
    %c0_i32_1 = arith.constant 0 : i32
    return %c0_i32, %c0_i32_0 : i32, i32
  }
  func.func @transform_6(%arg0: i32) -> (i32, i32) {
    %c0_i32 = arith.constant 0 : i32
    %c0_i32_0 = arith.constant 0 : i32
    %c0_i32_1 = arith.constant 0 : i32
    return %c0_i32, %c0_i32_0 : i32, i32
  }
  func.func @transform_7(%arg0: i32) -> (i32, i32) {
    %c0_i32 = arith.constant 0 : i32
    %c0_i32_0 = arith.constant 0 : i32
    return %arg0, %c0_i32 : i32, i32
  }
}

</mosaic_0001>

<bundles_post_ra>
// kernel: tpu_custom_call.1
= control target key start
LH: loop header
LB: loop body
LE: loop exit
PB: predicated region body
PF: predicated region fallthrough
CT: control target
= control target key end

     0   :  { %s592_s0 = inlined_call_operand.vmem [shape: f32[8,32], index: 0, kind: input, shape index: {}]   ;;  %s593_s1 = inlined_call_operand.hbm [shape: f32[32,64], index: 1, kind: input, shape index: {}]   ;;  %s594_s2 = inlined_call_operand.vmem [shape: f32[1,64], index: 2, kind: input, shape index: {}]   ;;  %s595_s3 = inlined_call_operand.vmem [shape: f32[64,64], index: 3, kind: input, shape index: {}]   ;;  %s596_s4 = inlined_call_operand.vmem [shape: f32[1,64], index: 4, kind: input, shape index: {}]   ;;  %s597_s5 = inlined_call_operand.vmem [shape: f32[64,1], index: 5, kind: input, shape index: {}]   ;;  %s598_s6 = inlined_call_operand.<no memory space> [shape: f32[1,1], index: 6, kind: input, shape index: {}]   ;;  %s599_s7 = inlined_call_operand.vmem [shape: f32[8,1], index: 7, kind: output, shape index: {}]  }
   0x1   :  { %v12_v0 = vstv %s598_s6 }
   0x2   :  { %13 = vst [vmem:[#allocation2] sm:$0x1] %v12_v0 }
   0x3   :  { %14 = vsyncpa [#allocation4], 0  ;;  %s456_s26 = smov [#allocation3]   ;;  %s432_s30 = scalar_lea.hbm %s593_s1, 512 }
   0x4   :  { %s22_s27 = sshll.u32 %s456_s26, 4  ;;  %p433_p0 = scmp.ne.s32.totalorder %s593_s1, %s432_s30  ;;  %s23_s27 = int_to_ptr.vmem [resolvable:$true] %s22_s27 }
   0x5   :  { %p436_p1 = scmp.lt.u32.totalorder %s432_s30, %s593_s1 }
   0x7   :  { %p438_p2 = pnand %p436_p1, %p433_p0 }
   0x9   :  { %441 = shalt.err (!%p438_p2)
}
   0xa   :  { %s442_s6 = scalar_lea.vmem %s23_s27, 512  ;;  %p447_p4 = scmp.lt.s32.totalorder %s23_s27, %s23_s27 }
   0xb   :  { %p443_p3 = scmp.ne.s32.totalorder %s23_s27, %s442_s6  ;;  %p448_p5 = scmp.lt.s32.totalorder %s442_s6, %s442_s6 }
   0xd   :  { %p449_p6 = por %p448_p5, %p447_p4 }
   0xf   :  { %p450_p7 = pnand %p449_p6, %p443_p3 }
  0x11   :  { %453 = shalt.err (!%p450_p7)
}
  0x12   :  { %s457_s12 = smov 128   ;;  %s458_s13 = smov 8  }
  0x13   :  { %28 = dma.hbm_to_vmem [thread:$0]  %s593_s1, 512, %s23_s27, [#allocation4], %s457_s12, %s457_s12, %s458_s13  }
  0x14   :  { %454 = dma.done.wait [#allocation4], 512  }
  0x15   :  { %455 = vsyncadd [#allocation4], 4294966784  ;;  %v459_v1 = vmov 0.0|0.0   ;;  %vm460_vm0 = vmmov 0   ;;  %v461_v2 = vmov 0.0   ;;  %v43_v3 = vld [vmem:[#allocation3] sm:$0xff] }
  0x16   :  { %392 = vmatprep.subr.bf16.mxu0 %v459_v1  ;;  %351 = vmatprep.mubr.msk.f32.mxu0 %vm460_vm0, %v461_v2  ;;  %v44_v4 = vld [vmem:[#allocation3 + $0x8] sm:$0xff]  ;;  %v45_v5 = vld [vmem:[#allocation3 + $0x10] sm:$0xff]  ;;  %v46_v7 = vld [vmem:[#allocation3 + $0x18] sm:$0xff]  ;;  %vm54_vm1 = vcmask 261120   ;;  %vm144_vm2 = vcmask 523264   ;;  %vm307_vm3 = vcmask 7168  }
  0x17   :  { %398 = vmatprep.subr.bf16.mxu1 %v459_v1  ;;  %370 = vmatprep.mubr.msk.f32.mxu1 %vm460_vm0, %v461_v2  ;;  %v393_v6 = vpack.c.bf16 %v44_v4, %v43_v3  ;;  %v129_v8 = vld [vmem:[%s595_s3] sm:$0xff]  ;;  %v130_v9 = vld [vmem:[%s595_s3 + $0x8] sm:$0xff]  ;;  %v396_v10 = vpack.c.bf16 %v46_v7, %v45_v5  ;;  %v131_v13 = vld [vmem:[%s595_s3 + $0x10] sm:$0xff] }
  0x18   :  { %v399_v11 = vpack.c.bf16 %v130_v9, %v129_v8  ;;  %v42_v12 = vld [vmem:[%s592_s0] sm:$0xff]  ;;  %v132_v14 = vld [vmem:[%s595_s3 + $0x18] sm:$0xff]  ;;  %v134_v17 = vld [vmem:[%s595_s3 + $0x28] sm:$0xff] }
  0x19   :  { %394 = vmatpush3.bf16.msra.mxu0 %v393_v6  ;;  %v402_v15 = vpack.c.bf16 %v132_v14, %v131_v13  ;;  %v133_v16 = vld [vmem:[%s595_s3 + $0x20] sm:$0xff]  ;;  %v135_v19 = vld [vmem:[%s595_s3 + $0x30] sm:$0xff]  ;;  %v136_v20 = vld [vmem:[%s595_s3 + $0x38] sm:$0xff] }
  0x1a   :  { %395 = vmatprep.subr.bf16.mxu0 %v459_v1  ;;  %400 = vmatpush3.bf16.msra.mxu1 %v399_v11  ;;  %v405_v18 = vpack.c.bf16 %v134_v17, %v133_v16  ;;  %v408_v21 = vpack.c.bf16 %v136_v20, %v135_v19  ;;  %v219_v22 = vld [vmem:[%s597_s5] sm:$0xff]  ;;  %v220_v23 = vld [vmem:[%s597_s5 + $0x8] sm:$0xff]  ;;  %v221_v30 = vld [vmem:[%s597_s5 + $0x10] sm:$0xff] }
  0x1b   :  { %401 = vmatprep.subr.bf16.mxu1 %v459_v1  ;;  %v411_v24 = vpack.c.bf16 %v220_v23, %v219_v22  ;;  %v314_v25 = vld [vmem:[%s594_s2] ss:$0 sm:$0xff]  ;;  %v222_v31 = vld [vmem:[%s597_s5 + $0x18] sm:$0xff]  ;;  %v224_v34 = vld [vmem:[%s597_s5 + $0x28] sm:$0xff] }
  0x1c   :  { %v414_v32 = vpack.c.bf16 %v222_v31, %v221_v30  ;;  %v223_v33 = vld [vmem:[%s597_s5 + $0x20] sm:$0xff]  ;;  %v225_v36 = vld [vmem:[%s597_s5 + $0x30] sm:$0xff]  ;;  %v226_v37 = vld [vmem:[%s597_s5 + $0x38] sm:$0xff] }
  0x1d   :  { %397 = vmatpush3.bf16.msra.mxu0 %v396_v10  ;;  %v417_v35 = vpack.c.bf16 %v224_v34, %v223_v33  ;;  %v420_v38 = vpack.c.bf16 %v226_v37, %v225_v36  ;;  %v316_v39 = vld [vmem:[%s596_s4] ss:$0 sm:$0xff] }
  0x1e   :  { %410 = vmatprep.subr.bf16.mxu0 %v459_v1  ;;  %403 = vmatpush3.bf16.msra.mxu1 %v402_v15  ;;  %v318_v44 = vld [vmem:[#allocation2] ss:$0 sm:$0xff] }
  0x1f   :  { %404 = vmatprep.subr.bf16.mxu1 %v459_v1 }
  0x20   :  { %352 = vmatmul.mubr.msk.f32.vlgmr.msra.gmra.mrb[0].mxu0 %vm54_vm1, %v42_v12 }
  0x21   :  { %389 = vmatprep.mubr.msk.f32.mxu0 %vm460_vm0, %v461_v2  ;;  %412 = vmatpush3.bf16.msra.mxu0 %v411_v24 }
  0x22   :  { %406 = vmatpush3.bf16.msra.mxu1 %v405_v18  ;;  %413 = vmatprep.subr.bf16.mxu0 %v459_v1 }
  0x23   :  { %407 = vmatprep.subr.bf16.mxu1 %v459_v1 }
  0x25   :  { %415 = vmatpush3.bf16.msra.mxu0 %v414_v32 }
  0x26   :  { %409 = vmatpush3.bf16.msra.mxu1 %v408_v21  ;;  %416 = vmatprep.subr.bf16.mxu0 %v459_v1 }
  0x29   :  { %418 = vmatpush3.bf16.msra.mxu0 %v417_v35 }
  0x2a   :  { %419 = vmatprep.subr.bf16.mxu0 %v459_v1 }
  0x2d   :  { %421 = vmatpush3.bf16.msra.mxu0 %v420_v38 }
  0xf3   :  { %v124_v26 = vpop.f32.mrb[0].mxu0 }
  0xf4   :  { %v125_v27 = vadd.f32 %v314_v25, %v124_v26  ;;  %v353_v28 = vpop.f32.mrb[1].mxu0 }
  0xf6   :  { %428 = vtanh.f32 %v125_v27 }
 0x100   :  { %v429_v29 = vpop.eup %428 }
 0x101   :  { %371 = vmatmul.mubr.msk.f32.vlgmr.msra.gmra.mrb[0].mxu1 %vm144_vm2, %v429_v29 }
 0x1d4   :  { %v214_v40 = vpop.f32.mrb[0].mxu1 }
 0x1d5   :  { %v215_v41 = vadd.f32 %v316_v39, %v214_v40  ;;  %v372_v42 = vpop.f32.mrb[1].mxu1 }
 0x1d7   :  { %430 = vtanh.f32 %v215_v41 }
 0x1e1   :  { %v431_v43 = vpop.eup %430 }
 0x1e2   :  { %390 = vmatmul.mubr.msk.f32.vlgmr.msra.gmra.mrb[2].mxu0 %vm144_vm2, %v431_v43 }
 0x2b5   :  { %v303_v45 = vpop.f32.mrb[2].mxu0 }
 0x2b6   :  { %v304_v46 = vadd.f32 %v318_v44, %v303_v45  ;;  %v391_v47 = vpop.f32.mrb[3].mxu0 }
 0x2b8   :  { %308 = vst.msk [vmem:[%s599_s7] sm:$0xff] %vm307_vm3, %v304_v46 }
 0x2b9   :  { %313 = vsyncpa [#allocation4], 1 }

</bundles_post_ra>
